<compile_context>
chip_gen: v7x
topology: tpu7x:2x2x1
jax: 0.10.0
libtpu: 0.0.40
codegen_flags: <defaults>
</compile_context>

<pallas_src>
import jax
import jax.numpy as jnp
from jax.experimental import pallas as pl
from jax.experimental.pallas import tpu as pltpu

# ---- small hyperparameters consistent with the module's __init__ ----------
VOCAB   = 64   # knowledge_pretrain_model.shared vocab (synthetic)
D_MODEL = 32   # config.d_model
K_SEQ   = 8    # args.knowledge_sequence_length
MID     = 32   # args.knowledge_mid_dim
N_LAYER = 2    # QA_config.num_decoder_layers (match_n_layer)
N_HEAD  = 4    # QA_config.num_heads          (match_n_head)
D_KV    = 8    # QA_config.d_kv               (match_n_embd)
OUT_DIM = N_LAYER * 2 * N_HEAD * D_KV         # 2*2*4*8 = 128 (lane-dense)


# ---------------------------------------------------------------------------
# Fused kernel, one grid step per batch element (grid=(B,), parallel):
#   embedding gather (bf16 one-hot matmul) -> masked cross-attention
#   (T5 stand-in) -> Linear -> Tanh -> Linear, all in VMEM.
# Only the final lane-dense (K, OUT_DIM=128) block per step is written to HBM.
# ---------------------------------------------------------------------------
def _fused_forward(ids_flat, mask3, shared_bf, kembed_bf, w1_bf, b1, w2_bf, b2):
    BS = ids_flat.shape[0]              # B * S
    B = mask3.shape[0]
    S = mask3.shape[2]
    K, D = kembed_bf.shape
    V = shared_bf.shape[0]
    MIDv = w1_bf.shape[1]
    OUT = w2_bf.shape[1]

    def kernel(ids_ref, mask_ref, shared_ref, kembed_ref,
               w1_ref, b1_ref, w2_ref, b2_ref, out_ref):
        # ---- encoder token embedding lookup as bf16 one-hot matmul (MXU) --
        # TODO(synk): replace the O(S*V) one-hot with a scalar-prefetch /
        # pl.Element row-gather once V grows beyond a few hundred (real T5
        # vocab would blow past VMEM, especially v7x's 64 MiB).
        ids = ids_ref[...]                                          # (S, 1) i32
        iota_v = jax.lax.broadcasted_iota(jnp.int32, (S, V), 1)
        onehot = (iota_v == ids).astype(jnp.bfloat16)               # exact in bf16
        enc = jnp.dot(onehot, shared_ref[...],
                      preferred_element_type=jnp.float32)           # (S, D) f32
        enc_bf = enc.astype(jnp.bfloat16)

        # ---- masked cross-attention (stand-in for T5 hidden-state path) ---
        # decoder prompt embeddings are identical across batch -> q is (K, D).
        # NB: T5-style attention does not scale scores by 1/sqrt(d_kv).
        q = kembed_ref[...]                                         # (K, D) bf16
        # contract on the last axis of both operands -> no materialized K^T
        scores = jax.lax.dot_general(
            q, enc_bf, (((1,), (1,)), ((), ())),
            preferred_element_type=jnp.float32)                     # (K, S) f32
        bias = jnp.where(mask_ref[0] > 0.5, 0.0, -1e9)              # (1, S) f32
        scores = scores + bias
        scores = scores - jnp.max(scores, axis=-1, keepdims=True)
        p = jnp.exp(scores)
        denom = jnp.sum(p, axis=-1, keepdims=True)
        p = p * pl.reciprocal(denom, approx=True)                   # EUP divide
        ctx = jnp.dot(p.astype(jnp.bfloat16), enc_bf,
                      preferred_element_type=jnp.float32)           # (K, D) f32

        # ---- knowledge_control_trans: Linear -> Tanh -> Linear ------------
        z = jnp.tanh(jnp.dot(ctx.astype(jnp.bfloat16), w1_ref[...],
                             preferred_element_type=jnp.float32) + b1_ref[...])
        y = (jnp.dot(z.astype(jnp.bfloat16), w2_ref[...],
                     preferred_element_type=jnp.float32) + b2_ref[...])
        out_ref[...] = y.astype(out_ref.dtype)                      # (K, 128)

    return pl.pallas_call(
        kernel,
        out_shape=jax.ShapeDtypeStruct((B * K, OUT), jnp.float32),
        grid=(B,),
        in_specs=[
            pl.BlockSpec((S, 1),      lambda b: (b, 0)),      # this batch's ids
            pl.BlockSpec((1, 1, S),   lambda b: (b, 0, 0)),   # this batch's mask
            pl.BlockSpec((V, D),      lambda b: (0, 0)),      # shared table (resident)
            pl.BlockSpec((K, D),      lambda b: (0, 0)),
            pl.BlockSpec((D, MIDv),   lambda b: (0, 0)),
            pl.BlockSpec((1, MIDv),   lambda b: (0, 0)),
            pl.BlockSpec((MIDv, OUT), lambda b: (0, 0)),
            pl.BlockSpec((1, OUT),    lambda b: (0, 0)),
        ],
        out_specs=pl.BlockSpec((K, OUT), lambda b: (b, 0)),   # lane-dense block
        compiler_params=pltpu.CompilerParams(
            dimension_semantics=("parallel",)),
    )(ids_flat, mask3, shared_bf, kembed_bf, w1_bf, b1, w2_bf, b2)


# ---------------------------------------------------------------------------
# Parameter construction (deterministic, mirrors the module's __init__ shapes)
# ---------------------------------------------------------------------------
def init_params(key):
    ks = jax.random.split(key, 5)
    shared = 0.02 * jax.random.normal(ks[0], (VOCAB, D_MODEL), jnp.float32)
    # knowledge_embed.weight <- shared.weight[5 : K+5]   (as in __init__)
    knowledge_embed = shared[5:K_SEQ + 5]
    w1 = 0.05 * jax.random.normal(ks[1], (D_MODEL, MID), jnp.float32)
    b1 = jnp.zeros((1, MID), jnp.float32)
    w2 = 0.05 * jax.random.normal(ks[2], (MID, OUT_DIM), jnp.float32)
    b2 = jnp.zeros((1, OUT_DIM), jnp.float32)
    return dict(shared=shared, knowledge_embed=knowledge_embed,
                w1=w1, b1=b1, w2=w2, b2=b2)


# ---------------------------------------------------------------------------
# Forward pass (hot path = one fused Pallas kernel, glue fused under jit)
# ---------------------------------------------------------------------------
@jax.jit
def knowledge_prompt_forward(params, cont_input_ids, cont_attention_mask):
    B, S = cont_attention_mask.shape

    ids_flat = cont_input_ids.reshape(B * S, 1).astype(jnp.int32)
    mask3 = cont_attention_mask.astype(jnp.float32).reshape(B, 1, S)

    # bf16 MXU operands (one-hot & weight matmuls accumulate in f32)
    shared_bf = params['shared'].astype(jnp.bfloat16)
    kembed_bf = params['knowledge_embed'].astype(jnp.bfloat16)
    w1_bf = params['w1'].astype(jnp.bfloat16)
    w2_bf = params['w2'].astype(jnp.bfloat16)

    # fused: embedding gather + masked cross-attn + control_trans MLP
    pkv_flat = _fused_forward(
        ids_flat, mask3, shared_bf, kembed_bf,
        w1_bf, params['b1'], w2_bf, params['b2'])          # (B*K, OUT)

    # domain loss: config.domain_loss_name == 'None'  ->  no loss
    domain_loss = None

    # view(bsz, seqlen, L*2, H, d_kv)
    pkv = pkv_flat.reshape(B, K_SEQ, N_LAYER * 2, N_HEAD, D_KV)
    # dropout(kd_prompt_dropout): identity in eval mode
    # permute([2, 0, 3, 1, 4]) -> (L*2, B, H, K, d_kv)
    pkv = jnp.transpose(pkv, (2, 0, 3, 1, 4))
    # .split(2) along dim 0 -> tuple of (2, B, H, K, d_kv) chunks
    past_key_values = tuple(pkv[i:i + 2] for i in range(0, N_LAYER * 2, 2))
    return past_key_values, domain_loss


if __name__ == "__main__":
    key = jax.random.PRNGKey(0)
    pkey, dkey = jax.random.split(key)
    params = init_params(pkey)

    B, S = 2, 16
    cont_input_ids = jax.random.randint(dkey, (B, S), 0, VOCAB, jnp.int32)
    # mask: second example has 4 padded positions at the end
    cont_attention_mask = jnp.ones((B, S), jnp.float32)
    cont_attention_mask = cont_attention_mask.at[1, S - 4:].set(0.0)

    past_key_values, domain_loss = knowledge_prompt_forward(
        params, cont_input_ids, cont_attention_mask)
    jax.block_until_ready(past_key_values)

    # sanity: (match_n_layer) chunks, each (2, B, H, K, d_kv)
    assert len(past_key_values) == N_LAYER
    assert past_key_values[0].shape == (2, B, N_HEAD, K_SEQ, D_KV)
    assert domain_loss is None
    print("KERNEL_OK")
</pallas_src>

<mosaic_0001>
module attributes {stable_mosaic.version = 11 : i64} {
  func.func @kernel(%arg0: i32, %arg1: memref<16x1xi32, #tpu.memory_space<vmem>>, %arg2: memref<1x1x16xf32, #tpu.memory_space<vmem>>, %arg3: memref<64x32xbf16, #tpu.memory_space<vmem>>, %arg4: memref<8x32xbf16, #tpu.memory_space<vmem>>, %arg5: memref<32x32xbf16, #tpu.memory_space<vmem>>, %arg6: memref<1x32xf32, #tpu.memory_space<vmem>>, %arg7: memref<32x128xbf16, #tpu.memory_space<vmem>>, %arg8: memref<1x128xf32, #tpu.memory_space<vmem>>, %arg9: memref<8x128xf32, #tpu.memory_space<vmem>>) attributes {dimension_semantics = [#tpu.dimension_semantics<parallel>], iteration_bounds = array<i64: 2>, scalar_prefetch = 0 : i64, scratch_operands = 0 : i64, tpu.core_type = #tpu.core_type<tc>, window_params = [{transform_indices = @transform_0, window_bounds = array<i64: 16, 1>}, {transform_indices = @transform_1, window_bounds = array<i64: 1, 1, 16>}, {pipeline_mode = #tpu.pipeline_mode<synchronous>, transform_indices = @transform_2, window_bounds = array<i64: 64, 32>}, {pipeline_mode = #tpu.pipeline_mode<synchronous>, transform_indices = @transform_3, window_bounds = array<i64: 8, 32>}, {pipeline_mode = #tpu.pipeline_mode<synchronous>, transform_indices = @transform_4, window_bounds = array<i64: 32, 32>}, {pipeline_mode = #tpu.pipeline_mode<synchronous>, transform_indices = @transform_5, window_bounds = array<i64: 1, 32>}, {pipeline_mode = #tpu.pipeline_mode<synchronous>, transform_indices = @transform_6, window_bounds = array<i64: 32, 128>}, {pipeline_mode = #tpu.pipeline_mode<synchronous>, transform_indices = @transform_7, window_bounds = array<i64: 1, 128>}, {transform_indices = @transform_8, window_bounds = array<i64: 8, 128>}]} {
    %c0 = arith.constant 0 : index
    %c0_0 = arith.constant 0 : index
    %0 = vector.load %arg1[%c0, %c0_0] : memref<16x1xi32, #tpu.memory_space<vmem>>, vector<16x1xi32>
    %1 = tpu.iota {dimensions = array<i32: 1>} : vector<16x64xi32>
    %2 = vector.broadcast %0 : vector<16x1xi32> to vector<16x64xi32>
    %3 = arith.cmpi eq, %1, %2 : vector<16x64xi32>
    %4 = arith.extui %3 : vector<16x64xi1> to vector<16x64xi32>
    %5 = arith.sitofp %4 : vector<16x64xi32> to vector<16x64xf32>
    %6 = arith.truncf %5 : vector<16x64xf32> to vector<16x64xbf16>
    %c0_1 = arith.constant 0 : index
    %c0_2 = arith.constant 0 : index
    %7 = vector.load %arg3[%c0_1, %c0_2] : memref<64x32xbf16, #tpu.memory_space<vmem>>, vector<64x32xbf16>
    %cst = arith.constant dense<0.000000e+00> : vector<16x32xf32>
    %8 = tpu.matmul %6, %7, %cst {dimension_numbers = #tpu.dot_dimension_numbers<[1], [0], [0], [1], [0, 0, 1, 1], [], []>} : vector<16x64xbf16>, vector<64x32xbf16>, vector<16x32xf32> -> vector<16x32xf32>
    %9 = arith.truncf %8 : vector<16x32xf32> to vector<16x32xbf16>
    %c0_3 = arith.constant 0 : index
    %c0_4 = arith.constant 0 : index
    %10 = vector.load %arg4[%c0_3, %c0_4] : memref<8x32xbf16, #tpu.memory_space<vmem>>, vector<8x32xbf16>
    %cst_5 = arith.constant dense<0.000000e+00> : vector<8x16xf32>
    %11 = tpu.matmul %10, %9, %cst_5 {dimension_numbers = #tpu.dot_dimension_numbers<[1], [1], [0], [0], [0, 0, 1, 0], [], []>} : vector<8x32xbf16>, vector<16x32xbf16>, vector<8x16xf32> -> vector<8x16xf32>
    %c0_6 = arith.constant 0 : index
    %c0_7 = arith.constant 0 : index
    %c0_8 = arith.constant 0 : index
    %12 = vector.load %arg2[%c0_6, %c0_7, %c0_8] : memref<1x1x16xf32, #tpu.memory_space<vmem>>, vector<1x1x16xf32>
    %13 = vector.shape_cast %12 : vector<1x1x16xf32> to vector<1x16xf32>
    %cst_9 = arith.constant 5.000000e-01 : f32
    %14 = vector.broadcast %cst_9 : f32 to vector<1x16xf32>
    %15 = arith.cmpf ogt, %13, %14 : vector<1x16xf32>
    %cst_10 = arith.constant 0.000000e+00 : f32
    %cst_11 = arith.constant -1.000000e+09 : f32
    %16 = vector.broadcast %cst_10 : f32 to vector<1x16xf32>
    %17 = vector.broadcast %cst_11 : f32 to vector<1x16xf32>
    %18 = arith.select %15, %16, %17 : vector<1x16xi1>, vector<1x16xf32>
    %19 = vector.broadcast %18 : vector<1x16xf32> to vector<8x16xf32>
    %20 = arith.addf %11, %19 : vector<8x16xf32>
    %cst_12 = arith.constant dense<0xFF800000> : vector<8xf32>
    %21 = vector.multi_reduction <maximumf>, %20, %cst_12 [1] : vector<8x16xf32> to vector<8xf32>
    %22 = vector.shape_cast %21 : vector<8xf32> to vector<8x1xf32>
    %23 = vector.broadcast %22 : vector<8x1xf32> to vector<8x16xf32>
    %24 = arith.subf %20, %23 : vector<8x16xf32>
    %25 = math.exp %24 : vector<8x16xf32>
    %cst_13 = arith.constant dense<0.000000e+00> : vector<8xf32>
    %26 = vector.multi_reduction <add>, %25, %cst_13 [1] : vector<8x16xf32> to vector<8xf32>
    %27 = vector.shape_cast %26 : vector<8xf32> to vector<8x1xf32>
    %28 = tpu.reciprocal %27 {approx = true} : vector<8x1xf32> -> vector<8x1xf32>
    %29 = vector.broadcast %28 : vector<8x1xf32> to vector<8x16xf32>
    %30 = arith.mulf %25, %29 : vector<8x16xf32>
    %31 = arith.truncf %30 : vector<8x16xf32> to vector<8x16xbf16>
    %cst_14 = arith.constant dense<0.000000e+00> : vector<8x32xf32>
    %32 = tpu.matmul %31, %9, %cst_14 {dimension_numbers = #tpu.dot_dimension_numbers<[1], [0], [0], [1], [0, 0, 1, 1], [], []>} : vector<8x16xbf16>, vector<16x32xbf16>, vector<8x32xf32> -> vector<8x32xf32>
    %33 = arith.truncf %32 : vector<8x32xf32> to vector<8x32xbf16>
    %c0_15 = arith.constant 0 : index
    %c0_16 = arith.constant 0 : index
    %34 = vector.load %arg5[%c0_15, %c0_16] : memref<32x32xbf16, #tpu.memory_space<vmem>>, vector<32x32xbf16>
    %cst_17 = arith.constant dense<0.000000e+00> : vector<8x32xf32>
    %35 = tpu.matmul %33, %34, %cst_17 {dimension_numbers = #tpu.dot_dimension_numbers<[1], [0], [0], [1], [0, 0, 1, 1], [], []>} : vector<8x32xbf16>, vector<32x32xbf16>, vector<8x32xf32> -> vector<8x32xf32>
    %c0_18 = arith.constant 0 : index
    %c0_19 = arith.constant 0 : index
    %36 = vector.load %arg6[%c0_18, %c0_19] : memref<1x32xf32, #tpu.memory_space<vmem>>, vector<1x32xf32>
    %37 = vector.broadcast %36 : vector<1x32xf32> to vector<8x32xf32>
    %38 = arith.addf %35, %37 : vector<8x32xf32>
    %39 = math.tanh %38 : vector<8x32xf32>
    %40 = arith.truncf %39 : vector<8x32xf32> to vector<8x32xbf16>
    %c0_20 = arith.constant 0 : index
    %c0_21 = arith.constant 0 : index
    %41 = vector.load %arg7[%c0_20, %c0_21] : memref<32x128xbf16, #tpu.memory_space<vmem>>, vector<32x128xbf16>
    %cst_22 = arith.constant dense<0.000000e+00> : vector<8x128xf32>
    %42 = tpu.matmul %40, %41, %cst_22 {dimension_numbers = #tpu.dot_dimension_numbers<[1], [0], [0], [1], [0, 0, 1, 1], [], []>} : vector<8x32xbf16>, vector<32x128xbf16>, vector<8x128xf32> -> vector<8x128xf32>
    %c0_23 = arith.constant 0 : index
    %c0_24 = arith.constant 0 : index
    %43 = vector.load %arg8[%c0_23, %c0_24] : memref<1x128xf32, #tpu.memory_space<vmem>>, vector<1x128xf32>
    %44 = vector.broadcast %43 : vector<1x128xf32> to vector<8x128xf32>
    %45 = arith.addf %42, %44 : vector<8x128xf32>
    %c0_25 = arith.constant 0 : index
    %c0_26 = arith.constant 0 : index
    %46 = vector.load %arg9[%c0_25, %c0_26] : memref<8x128xf32, #tpu.memory_space<vmem>>, vector<8x128xf32>
    tpu.vector_store %arg9[%c0_25, %c0_26], %45 {strides = array<i32>} : memref<8x128xf32, #tpu.memory_space<vmem>>, vector<8x128xf32>,
    return
  }
  func.func @transform_0(%arg0: i32) -> (i32, i32) {
    %c0_i32 = arith.constant 0 : i32
    %c0_i32_0 = arith.constant 0 : i32
    return %arg0, %c0_i32 : i32, i32
  }
  func.func @transform_1(%arg0: i32) -> (i32, i32, i32) {
    %c0_i32 = arith.constant 0 : i32
    %c0_i32_0 = arith.constant 0 : i32
    %c0_i32_1 = arith.constant 0 : i32
    return %arg0, %c0_i32, %c0_i32_0 : i32, i32, i32
  }
  func.func @transform_2(%arg0: i32) -> (i32, i32) {
    %c0_i32 = arith.constant 0 : i32
    %c0_i32_0 = arith.constant 0 : i32
    %c0_i32_1 = arith.constant 0 : i32
    return %c0_i32, %c0_i32_0 : i32, i32
  }
  func.func @transform_3(%arg0: i32) -> (i32, i32) {
    %c0_i32 = arith.constant 0 : i32
    %c0_i32_0 = arith.constant 0 : i32
    %c0_i32_1 = arith.constant 0 : i32
    return %c0_i32, %c0_i32_0 : i32, i32
  }
  func.func @transform_4(%arg0: i32) -> (i32, i32) {
    %c0_i32 = arith.constant 0 : i32
    %c0_i32_0 = arith.constant 0 : i32
    %c0_i32_1 = arith.constant 0 : i32
    return %c0_i32, %c0_i32_0 : i32, i32
  }
  func.func @transform_5(%arg0: i32) -> (i32, i32) {
    %c0_i32 = arith.constant 0 : i32
    %c0_i32_0 = arith.constant 0 : i32
    %c0_i32_1 = arith.constant 0 : i32
    return %c0_i32, %c0_i32_0 : i32, i32
  }
  func.func @transform_6(%arg0: i32) -> (i32, i32) {
    %c0_i32 = arith.constant 0 : i32
    %c0_i32_0 = arith.constant 0 : i32
    %c0_i32_1 = arith.constant 0 : i32
    return %c0_i32, %c0_i32_0 : i32, i32
  }
  func.func @transform_7(%arg0: i32) -> (i32, i32) {
    %c0_i32 = arith.constant 0 : i32
    %c0_i32_0 = arith.constant 0 : i32
    %c0_i32_1 = arith.constant 0 : i32
    return %c0_i32, %c0_i32_0 : i32, i32
  }
  func.func @transform_8(%arg0: i32) -> (i32, i32) {
    %c0_i32 = arith.constant 0 : i32
    %c0_i32_0 = arith.constant 0 : i32
    return %arg0, %c0_i32 : i32, i32
  }
}

</mosaic_0001>

<bundles_post_ra>
// kernel: knowledge_prompt_forward.1
= control target key start
LH: loop header
LB: loop body
LE: loop exit
PB: predicated region body
PF: predicated region fallthrough
CT: control target
= control target key end

     0   :  { %s893_s27 = smov 0   ;;  %s984_s0 = inlined_call_operand.vmem [shape: s32[32,1], index: 0, kind: input, shape index: {}]   ;;  %s985_s1 = inlined_call_operand.vmem [shape: f32[2,1,16], index: 1, kind: input, shape index: {}]   ;;  %s986_s2 = inlined_call_operand.vmem [shape: bf16[64,32], index: 2, kind: input, shape index: {}]   ;;  %s987_s3 = inlined_call_operand.vmem [shape: bf16[8,32], index: 3, kind: input, shape index: {}]   ;;  %s988_s4 = inlined_call_operand.vmem [shape: bf16[32,32], index: 4, kind: input, shape index: {}]   ;;  %s989_s5 = inlined_call_operand.vmem [shape: f32[1,32], index: 5, kind: input, shape index: {}]   ;;  %s990_s6 = inlined_call_operand.vmem [shape: bf16[32,128], index: 6, kind: input, shape index: {}]   ;;  %s991_s7 = inlined_call_operand.vmem [shape: f32[1,128], index: 7, kind: input, shape index: {}]   ;;  %s992_s8 = inlined_call_operand.vmem [shape: f32[16,128], index: 8, kind: output, shape index: {}]  }
   0x1 LB: > { %s899_s28 = sadd.s32 4294967295, %s842_s27   ;;  %p731_p0 = scmp.ge.s32.totalorder %s842_s27, 1  ;;  %s842_s27 = sphi %s893_s27, %s18_s27  }
   0x2   : > { %p271_p1 = scmp.lt.s32.totalorder %s842_s27, 3 }
   0x4   : > { %p272_p2 = pnand %p731_p0, %p271_p1 }
   0x5   : > { %s732_s29 = sshll.u32 (!%p272_p2), %s899_s28, 1  ;;  %v822_v0 = vld [vmem:[%s986_s2] sm:$0xff] (!%p272_p2)   ;;  %v844_v1 = vmov (!%p272_p2), 0   ;;  %v845_v2 = vmov (!%p272_p2), 0.0   ;;  %v823_v3 = vld [vmem:[%s986_s2 + $0x8] sm:$0xff] (!%p272_p2)   ;;  %v824_v5 = vld [vmem:[%s986_s2 + $0x10] sm:$0xff] (!%p272_p2)   ;;  %v323_v8 = vlaneseq (!%p272_p2) }
   0x6   : > { %275 = sbr.rel (%p272_p2) target bundleno = 1563 (0x61b), region = 52  ;;  %821 = vset.pattern.permute.xlu0 (!%p272_p2), %v844_v1  ;;  %p308_p3 = scmp.lt.s32.totalorder (!%p272_p2), %s732_s29, 3  ;;  %769 = vmatprep.subr.bf16.mxu0 (!%p272_p2), %v845_v2  ;;  %v825_v7 = vld [vmem:[%s986_s2 + $0x18] sm:$0xff] (!%p272_p2)   ;;  %vm846_vm0 = vmmov (!%p272_p2), 0   ;;  %vm370_vm3 = vcmask (!%p272_p2), 523264   ;;  %vm426_vm4 = vcmask (!%p272_p2), 261120  }
   0x7   : > { %770 = vmatpush3.bf16.msra.mxu0 (!%p272_p2), %v822_v0  ;;  %781 = vmatprep.subr.bf16.mxu1 (!%p272_p2), %v845_v2  ;;  %v324_v9 = vand.u32 (!%p272_p2), 127, %v323_v8  ;;  %v416_v21 = vld [vmem:[%s987_s3] sm:$0xf] (!%p272_p2)  ;;  %p313_p4 = scmp.lt.s32.totalorder (!%p272_p2), %s899_s28, 1  ;;  %v422_v23 = vshrl.u32 (!%p272_p2), %v323_v8, 7  ;;  %vm473_vm6 = vcmask (!%p272_p2), 130048  }
   0x8   : > { %771 = vmatprep.subr.bf16.mxu0 (!%p272_p2), %v845_v2  ;;  %777 = vmatprep.mubr.msk.bf16.mxu0 (!%p272_p2), %vm846_vm0, %v845_v2  ;;  %v847_v25 = vmov (!%p272_p2), -1e+09   ;;  %v826_v39 = vld [vmem:[%s988_s4] sm:$0xff] (!%p272_p2)   ;;  %v827_v40 = vld [vmem:[%s988_s4 + $0x8] sm:$0xff] (!%p272_p2)  }
   0x9   : > { %783 = vmatprep.mubr.msk.bf16.mxu1 (!%p272_p2), %vm846_vm0, %v845_v2  ;;  %v423_v24 = vsub.s32 (!%p272_p2), 0, %v422_v23  ;;  %v828_v50 = vld [vmem:[%s990_s6] sm:$0xff] (!%p272_p2)   ;;  %v829_v51 = vld [vmem:[%s990_s6 + $0x8] sm:$0xff] (!%p272_p2)  }
   0xa   : > { %v744_v52 = vld [vmem:[%s989_s5] ss:$0 sm:$0xff] (!%p272_p2) }
   0xb   : > { %772 = vmatpush3.bf16.msra.mxu0 (!%p272_p2), %v823_v3  ;;  %v748_v60 = vld [vmem:[%s991_s7] ss:$0 sm:$0xff] (!%p272_p2) }
   0xc   : > { %773 = vmatprep.subr.bf16.mxu0 (!%p272_p2), %v845_v2 }
   0xd   : > { %s994_s29 = smov (!%p308_p3, %s732_s29), 3  ;;  %s996_s28 = smov (!%p313_p4, %s899_s28), 1 }
   0xe   : > { %s733_s12 = sshll.u32 %s994_s29, 3  ;;  %s315_s24 = scalar_lea.vmem %s985_s1, %s996_s28 }
   0xf   : > { %s311_s15 = scalar_lea.vmem %s984_s0, %s733_s12  ;;  %774 = vmatpush3.bf16.msra.mxu0 %v824_v5  ;;  %v417_v22 = vld [vmem:[%s315_s24] sm:$0x1] }
  0x10   : > { %v321_v4 = vld [vmem:[%s311_s15] sm:$0xff]  ;;  %v322_v6 = vld [vmem:[%s311_s15 + $0x8] sm:$0xff]  ;;  %775 = vmatprep.subr.bf16.mxu0 %v845_v2  ;;  %vm418_vm5 = vcmp.gt.f32.partialorder %v417_v22, 0.5  ;;  %s734_s15 = sshll.u32 %s996_s28, 3 }
  0x11   : > { %326 = vperm.xlu0 %821, %v321_v4   ;;  %v419_v26 = vsel %vm418_vm5, 0.0, %v847_v25  ;;  %s319_s20 = scalar_lea.vmem %s992_s8, %s734_s15 }
  0x12   : > { %v424_v27 = vrot.slane %v419_v26, %v423_v24 }
  0x13   : > { %776 = vmatpush3.bf16.msra.mxu0 %v825_v7 }
  0x14   : > { %793 = vmatprep.subr.bf16.mxu0 %v845_v2 }
  0x15   : > { %329 = vperm.xlu0 %821, %v322_v6  }
  0x90   : > { %v327_v10 = vpop.permute.xlu0 %326 }
  0x91   : > { %vm331_vm1 = vcmp.eq.s32.totalorder %v324_v9, %v327_v10 }
  0x92   : > { %v735_v12 = vsel %vm331_vm1, 1.0, %v845_v2 }
  0x94   : > { %v330_v11 = vpop.permute.xlu0 %329 }
  0x95   : > { %vm332_vm2 = vcmp.eq.s32.totalorder %v324_v9, %v330_v11 }
  0x96   : > { %v736_v13 = vsel %vm332_vm2, 1.0, %v845_v2 }
  0x97   : > { %v337_v14 = vpack.c.bf16 %v736_v13, %v735_v12 }
  0x99   : > { %778 = vmatmul.mubr.msk.bf16.vlgmr.msra.gmra.mrb[0].mxu0 %vm370_vm3, %v337_v14 }
  0x9a   : > { %797 = vmatprep.mubr.msk.bf16.mxu0 %vm846_vm0, %v845_v2  ;;  %794 = vmatpush3.bf16.msra.mxu0 %v826_v39 }
  0x9b   : > { %795 = vmatprep.subr.bf16.mxu0 %v845_v2 }
  0x9e   : > { %796 = vmatpush3.bf16.msra.mxu0 %v827_v40 }
 0x16c   : > { %v408_v15 = vpop.f32.mrb[0].mxu0 }
 0x16d   : > { %v779_v16 = vpop.f32.mrb[1].mxu0 }
 0x16e   : > { %v411_v17 = vpop.f32.mrb[2].mxu0 }
 0x16f   : > { %v415_v18 = vpack.c.bf16 %v411_v17, %v408_v15  ;;  %v780_v19 = vpop.f32.mrb[3].mxu0 }
 0x171   : > { %v431_v20 = vsel %vm426_vm4, %v415_v18, 0 }
 0x172   : > { %782 = vmatpush3.bf16.xpose.msra.mxu1 %v431_v20 }
 0x173   : > { %787 = vmatprep.subr.bf16.mxu1 %v845_v2 }
 0x179   : > { %784 = vmatmul.mubr.msk.bf16.vlgmr.msra.gmra.mrb[0].mxu1 %vm426_vm4, %v416_v21 }
 0x17a   : > { %788 = vmatpush3.bf16.msra.mxu1 %v415_v18  ;;  %789 = vmatprep.mubr.msk.bf16.mxu1 %vm846_vm0, %v845_v2 }
 0x17b   : > { %801 = vmatprep.subr.bf16.mxu1 %v845_v2 }
 0x24c   : > { %v467_v28 = vpop.f32.mrb[0].mxu1 }
 0x24d   : > { %v468_v29 = vadd.f32 %v467_v28, %v424_v27  ;;  %v785_v30 = vpop.f32.mrb[1].mxu1 }
 0x24e   : > { %v470_v31 = vpop.f32.mrb[2].mxu1 }
 0x24f   : > { %v786_v32 = vpop.f32.mrb[3].mxu1  ;;  %v474_v33 = vsel %vm473_vm6, %v468_v29, -inf }
 0x250   : > { %475 = vmax.xlane.f32.xlu1 %v474_v33 }
 0x2dd   : > { %v476_v34 = vpop.xlane.xlu1 %475 }
 0x2de   : > { %v477_v35 = vsub.f32 %v468_v29, %v476_v34 }
 0x2e0   : > { %v478_v36 = vmul.f32 1.442695, %v477_v35 }
 0x2e2   : > { %830 = vpow2.f32 %v478_v36 }
 0x2ec   : > { %v831_v37 = vpop.eup %830 }
 0x2ed   : > { %v480_v38 = vsel %vm473_vm6, %v831_v37, 0.0 }
 0x2ee   : > { %481 = vadd.xlane.f32.xlu1 %v480_v38 }
 0x37b   : > { %v482_v41 = vpop.xlane.xlu1 %481 }
 0x37c   : > { %832 = vrcp.f32 %v482_v41 }
 0x386   : > { %v833_v42 = vpop.eup %832 }
 0x387   : > { %v484_v43 = vmul.f32 %v833_v42, %v831_v37 }
 0x389   : > { %v485_v44 = vpack.c.bf16 %v484_v43, %v484_v43 }
 0x38b   : > { %790 = vmatmul.mubr.msk.bf16.vlgmr.msra.gmra.mrb[4].mxu1 %vm473_vm6, %v485_v44 }
 0x38c   : > { %805 = vmatprep.mubr.msk.bf16.mxu1 %vm846_vm0, %v845_v2  ;;  %802 = vmatpush3.bf16.msra.mxu1 %v828_v50 }
 0x38d   : > { %803 = vmatprep.subr.bf16.mxu1 %v845_v2 }
 0x390   : > { %804 = vmatpush3.bf16.msra.mxu1 %v829_v51 }
 0x45e   : > { %v523_v45 = vpop.f32.mrb[4].mxu1 }
 0x45f   : > { %v529_v46 = vpack.c.bf16 %v523_v45, %v523_v45  ;;  %v791_v47 = vpop.f32.mrb[5].mxu1 }
 0x460   : > { %v526_v48 = vpop.f32.mrb[6].mxu1 }
 0x461   : > { %v792_v49 = vpop.f32.mrb[7].mxu1  ;;  %798 = vmatmul.mubr.msk.bf16.vlgmr.msra.gmra.mrb[4].mxu0 %vm426_vm4, %v529_v46 }
 0x534   : > { %v590_v53 = vpop.f32.mrb[4].mxu0 }
 0x535   : > { %v591_v54 = vadd.f32 %v744_v52, %v590_v53  ;;  %v799_v55 = vpop.f32.mrb[5].mxu0 }
 0x536   : > { %v593_v56 = vpop.f32.mrb[6].mxu0 }
 0x537   : > { %834 = vtanh.f32 %v591_v54  ;;  %v800_v57 = vpop.f32.mrb[7].mxu0 }
 0x541   : > { %v835_v58 = vpop.eup %834 }
 0x542   : > { %v597_v59 = vpack.c.bf16 %v835_v58, %v835_v58 }
 0x544   : > { %806 = vmatmul.mubr.msk.bf16.vlgmr.msra.gmra.mrb[8].mxu1 %vm426_vm4, %v597_v59 }
 0x617   : > { %v658_v61 = vpop.f32.mrb[8].mxu1 }
 0x618   : > { %v659_v62 = vadd.f32 %v748_v60, %v658_v61  ;;  %v807_v63 = vpop.f32.mrb[9].mxu1 }
 0x619   : > { %v661_v0 = vpop.f32.mrb[10].mxu1 }
 0x61a   : > { %664 = vst [vmem:[%s319_s20] sm:$0xff] %v659_v62  ;;  %v808_v1 = vpop.f32.mrb[11].mxu1 }
 0x61b PF: > { %s18_s27 = sadd.s32 1, %s842_s27  }
 0x61c   : > { %p15_p5 = scmp.ge.s32.totalorder %s18_s27, 4  }
 0x61e   :  { %17 = sbr.rel (!%p15_p5) target bundleno = 1 (0x1), region = 85 }

</bundles_post_ra>
